<compile_context>
chip_gen: v5e
topology: v5e:2x2
jax: 0.10.0
libtpu: 0.0.40
codegen_flags: <defaults>
</compile_context>

<pallas_src>
import functools
import math

import jax
import jax.numpy as jnp
from jax.experimental import pallas as pl
from jax.experimental.pallas import tpu as pltpu

_LANE = 128


def _round_up(n, m):
    return ((n + m - 1) // m) * m


def _mlp_policy_kernel(num_linear, *refs):
    # refs = (obs_ref, w_0, b_0, ..., w_{L-1}, b_{L-1}, mean_ref)
    x_ref = refs[0]
    param_refs = refs[1:1 + 2 * num_linear]
    mean_ref = refs[1 + 2 * num_linear]

    h = x_ref[...]                                    # f32 (tile_b, ob_dim)
    for layer in range(num_linear):
        w = param_refs[2 * layer][...]                # bf16 (in_pad, out_pad)
        b = param_refs[2 * layer + 1][...]            # f32  (1, out_pad)
        # bf16 MXU operands, f32 accumulation; bias add / tanh in f32 (v5e-safe).
        h = jnp.dot(h.astype(jnp.bfloat16), w,
                    preferred_element_type=jnp.float32) + b
        if layer < num_linear - 1:                    # hidden activation = tanh
            h = jnp.tanh(h)
        # output activation = identity
    mean_ref[...] = h.astype(mean_ref.dtype)


def mlp_policy_forward(obs, weights, biases, logstd, *, batch_tile=1024,
                       param_dtype=jnp.bfloat16):
    """Returns (mean, std) of the Normal action distribution.

    obs:     (batch, ob_dim) float32
    weights: list of (in, out) float32 arrays (transpose of torch nn.Linear.weight)
    biases:  list of (out,) float32 arrays
    logstd:  (ac_dim,) float32
    """
    num_linear = len(weights)
    batch, ob_dim = obs.shape
    ac_dim = weights[-1].shape[1]

    # ---- pad feature dims (hidden + output) to lane multiples; math stays exact ----
    dims = [ob_dim] + [w.shape[1] for w in weights]
    padded_dims = [ob_dim] + [_round_up(d, _LANE) for d in dims[1:]]
    ac_pad = padded_dims[-1]

    w_p, b_p = [], []
    for i, (w, b) in enumerate(zip(weights, biases)):
        in_d, out_d = padded_dims[i], padded_dims[i + 1]
        wp = jnp.zeros((in_d, out_d), param_dtype)
        wp = wp.at[:w.shape[0], :w.shape[1]].set(w.astype(param_dtype))
        bp = jnp.zeros((1, out_d), jnp.float32).at[:, :b.shape[0]].set(b)
        w_p.append(wp)
        b_p.append(bp)

    # ---- pad batch to a multiple of the tile so block_shape divides the array ----
    batch_tile = _round_up(max(int(batch_tile), 8), 8)
    tile_b = min(batch_tile, _round_up(batch, 8))
    padded_batch = _round_up(batch, tile_b)
    obs_p = obs if padded_batch == batch else jnp.pad(
        obs, ((0, padded_batch - batch), (0, 0)))
    grid = (padded_batch // tile_b,)

    inputs = [obs_p]
    for w, b in zip(w_p, b_p):
        inputs.append(w)
        inputs.append(b)

    in_specs = [pl.BlockSpec((tile_b, ob_dim), lambda i: (i, 0))]
    for a in inputs[1:]:
        # full-array blocks, constant block index -> stay resident in VMEM across steps
        in_specs.append(pl.BlockSpec(a.shape, lambda i: (0, 0)))
    out_specs = pl.BlockSpec((tile_b, ac_pad), lambda i: (i, 0))
    out_shape = jax.ShapeDtypeStruct((padded_batch, ac_pad), jnp.float32)

    flops = 2 * padded_batch * sum(
        padded_dims[i] * padded_dims[i + 1] for i in range(num_linear))
    transcendentals = padded_batch * sum(padded_dims[1:-1])          # tanh count
    bytes_accessed = (obs_p.size * 4 + padded_batch * ac_pad * 4
                      + sum(int(w.size) * w.dtype.itemsize for w in w_p)
                      + sum(int(b.size) * 4 for b in b_p))

    kernel = functools.partial(_mlp_policy_kernel, num_linear)
    mean_padded = pl.pallas_call(
        kernel,
        out_shape=out_shape,
        grid=grid,
        in_specs=in_specs,
        out_specs=out_specs,
        compiler_params=pltpu.CompilerParams(
            dimension_semantics=("parallel",),      # megacore sharding on v7x
            vmem_limit_bytes=32 * 1024 * 1024,      # ample headroom on v5e/v6e/v7x
        ),
        cost_estimate=pl.CostEstimate(
            flops=flops,
            transcendentals=transcendentals,
            bytes_accessed=bytes_accessed,
        ),
    )(*inputs)

    mean = mean_padded[:batch, :ac_dim]
    std = jnp.exp(logstd)   # ac_dim scalars: plain JAX, no kernel DMA needed
    return mean, std


def init_mlp_params(key, ob_dim, ac_dim, n_layers, size):
    """Deterministic init matching nn.Linear's U(-1/sqrt(fan_in), 1/sqrt(fan_in))."""
    dims = [ob_dim] + [size] * n_layers + [ac_dim]
    weights, biases = [], []
    for i in range(len(dims) - 1):
        fan_in, fan_out = dims[i], dims[i + 1]
        k = 1.0 / math.sqrt(fan_in)
        key, kw, kb = jax.random.split(key, 3)
        # stored as (in, out) == transpose of PyTorch's (out, in)
        weights.append(jax.random.uniform(kw, (fan_in, fan_out), jnp.float32, -k, k))
        biases.append(jax.random.uniform(kb, (fan_out,), jnp.float32, -k, k))
    logstd = jnp.zeros((ac_dim,), jnp.float32)  # nn.Parameter(torch.zeros(ac_dim))
    return weights, biases, logstd


def reference_forward(obs, weights, biases, logstd):
    h = obs
    for i, (w, b) in enumerate(zip(weights, biases)):
        h = h @ w + b
        if i < len(weights) - 1:
            h = jnp.tanh(h)
    return h, jnp.exp(logstd)


if __name__ == "__main__":
    # Small shapes consistent with MLPPolicySL(ac_dim, ob_dim, n_layers, size).
    # batch=40 with batch_tile=16 exercises both the multi-step grid and tail padding.
    ob_dim, ac_dim, n_layers, size = 16, 4, 2, 32
    batch, batch_tile = 40, 16

    key = jax.random.PRNGKey(0)
    key, k_obs = jax.random.split(key)
    obs = jax.random.normal(k_obs, (batch, ob_dim), jnp.float32)

    weights, biases, logstd = init_mlp_params(key, ob_dim, ac_dim, n_layers, size)

    mean, std = mlp_policy_forward(obs, weights, biases, logstd, batch_tile=batch_tile)
    jax.block_until_ready((mean, std))

    ref_mean, ref_std = reference_forward(obs, weights, biases, logstd)
    assert mean.shape == (batch, ac_dim)
    assert std.shape == (ac_dim,)
    # bf16 MXU operands (f32 accumulation) -> slightly looser tolerance than pure f32.
    assert jnp.allclose(mean, ref_mean, atol=2e-2, rtol=2e-2), \
        float(jnp.max(jnp.abs(mean - ref_mean)))
    assert jnp.allclose(std, ref_std, atol=1e-6, rtol=1e-6)

    # TODO(synk): dist.sample() / log_prob (torch.distributions.Normal) are left to the
    # caller; the kernel produces the distribution parameters (mean, std) exactly.
    print("KERNEL_OK")
</pallas_src>

<mosaic_0001>
module attributes {stable_mosaic.version = 11 : i64} {
  func.func @_mlp_policy_kernel(%arg0: i32, %arg1: memref<16x16xf32, #tpu.memory_space<vmem>>, %arg2: memref<16x128xbf16, #tpu.memory_space<vmem>>, %arg3: memref<1x128xf32, #tpu.memory_space<vmem>>, %arg4: memref<128x128xbf16, #tpu.memory_space<vmem>>, %arg5: memref<1x128xf32, #tpu.memory_space<vmem>>, %arg6: memref<128x128xbf16, #tpu.memory_space<vmem>>, %arg7: memref<1x128xf32, #tpu.memory_space<vmem>>, %arg8: memref<16x128xf32, #tpu.memory_space<vmem>>) attributes {dimension_semantics = [#tpu.dimension_semantics<parallel>], iteration_bounds = array<i64: 3>, scalar_prefetch = 0 : i64, scratch_operands = 0 : i64, tpu.core_type = #tpu.core_type<tc>, window_params = [{transform_indices = @transform_0, window_bounds = array<i64: 16, 16>}, {pipeline_mode = #tpu.pipeline_mode<synchronous>, transform_indices = @transform_1, window_bounds = array<i64: 16, 128>}, {pipeline_mode = #tpu.pipeline_mode<synchronous>, transform_indices = @transform_2, window_bounds = array<i64: 1, 128>}, {pipeline_mode = #tpu.pipeline_mode<synchronous>, transform_indices = @transform_3, window_bounds = array<i64: 128, 128>}, {pipeline_mode = #tpu.pipeline_mode<synchronous>, transform_indices = @transform_4, window_bounds = array<i64: 1, 128>}, {pipeline_mode = #tpu.pipeline_mode<synchronous>, transform_indices = @transform_5, window_bounds = array<i64: 128, 128>}, {pipeline_mode = #tpu.pipeline_mode<synchronous>, transform_indices = @transform_6, window_bounds = array<i64: 1, 128>}, {transform_indices = @transform_7, window_bounds = array<i64: 16, 128>}]} {
    %c0 = arith.constant 0 : index
    %c0_0 = arith.constant 0 : index
    %0 = vector.load %arg1[%c0, %c0_0] : memref<16x16xf32, #tpu.memory_space<vmem>>, vector<16x16xf32>
    %c0_1 = arith.constant 0 : index
    %c0_2 = arith.constant 0 : index
    %1 = vector.load %arg2[%c0_1, %c0_2] : memref<16x128xbf16, #tpu.memory_space<vmem>>, vector<16x128xbf16>
    %c0_3 = arith.constant 0 : index
    %c0_4 = arith.constant 0 : index
    %2 = vector.load %arg3[%c0_3, %c0_4] : memref<1x128xf32, #tpu.memory_space<vmem>>, vector<1x128xf32>
    %3 = arith.truncf %0 : vector<16x16xf32> to vector<16x16xbf16>
    %cst = arith.constant dense<0.000000e+00> : vector<16x128xf32>
    %4 = tpu.matmul %3, %1, %cst {dimension_numbers = #tpu.dot_dimension_numbers<[1], [0], [0], [1], [0, 0, 1, 1], [], []>} : vector<16x16xbf16>, vector<16x128xbf16>, vector<16x128xf32> -> vector<16x128xf32>
    %5 = vector.broadcast %2 : vector<1x128xf32> to vector<16x128xf32>
    %6 = arith.addf %4, %5 : vector<16x128xf32>
    %7 = math.tanh %6 : vector<16x128xf32>
    %c0_5 = arith.constant 0 : index
    %c0_6 = arith.constant 0 : index
    %8 = vector.load %arg4[%c0_5, %c0_6] : memref<128x128xbf16, #tpu.memory_space<vmem>>, vector<128x128xbf16>
    %c0_7 = arith.constant 0 : index
    %c0_8 = arith.constant 0 : index
    %9 = vector.load %arg5[%c0_7, %c0_8] : memref<1x128xf32, #tpu.memory_space<vmem>>, vector<1x128xf32>
    %10 = arith.truncf %7 : vector<16x128xf32> to vector<16x128xbf16>
    %cst_9 = arith.constant dense<0.000000e+00> : vector<16x128xf32>
    %11 = tpu.matmul %10, %8, %cst_9 {dimension_numbers = #tpu.dot_dimension_numbers<[1], [0], [0], [1], [0, 0, 1, 1], [], []>} : vector<16x128xbf16>, vector<128x128xbf16>, vector<16x128xf32> -> vector<16x128xf32>
    %12 = vector.broadcast %9 : vector<1x128xf32> to vector<16x128xf32>
    %13 = arith.addf %11, %12 : vector<16x128xf32>
    %14 = math.tanh %13 : vector<16x128xf32>
    %c0_10 = arith.constant 0 : index
    %c0_11 = arith.constant 0 : index
    %15 = vector.load %arg6[%c0_10, %c0_11] : memref<128x128xbf16, #tpu.memory_space<vmem>>, vector<128x128xbf16>
    %c0_12 = arith.constant 0 : index
    %c0_13 = arith.constant 0 : index
    %16 = vector.load %arg7[%c0_12, %c0_13] : memref<1x128xf32, #tpu.memory_space<vmem>>, vector<1x128xf32>
    %17 = arith.truncf %14 : vector<16x128xf32> to vector<16x128xbf16>
    %cst_14 = arith.constant dense<0.000000e+00> : vector<16x128xf32>
    %18 = tpu.matmul %17, %15, %cst_14 {dimension_numbers = #tpu.dot_dimension_numbers<[1], [0], [0], [1], [0, 0, 1, 1], [], []>} : vector<16x128xbf16>, vector<128x128xbf16>, vector<16x128xf32> -> vector<16x128xf32>
    %19 = vector.broadcast %16 : vector<1x128xf32> to vector<16x128xf32>
    %20 = arith.addf %18, %19 : vector<16x128xf32>
    %c0_15 = arith.constant 0 : index
    %c0_16 = arith.constant 0 : index
    %21 = vector.load %arg8[%c0_15, %c0_16] : memref<16x128xf32, #tpu.memory_space<vmem>>, vector<16x128xf32>
    tpu.vector_store %arg8[%c0_15, %c0_16], %20 {strides = array<i32>} : memref<16x128xf32, #tpu.memory_space<vmem>>, vector<16x128xf32>,
    return
  }
  func.func @transform_0(%arg0: i32) -> (i32, i32) {
    %c0_i32 = arith.constant 0 : i32
    %c0_i32_0 = arith.constant 0 : i32
    return %arg0, %c0_i32 : i32, i32
  }
  func.func @transform_1(%arg0: i32) -> (i32, i32) {
    %c0_i32 = arith.constant 0 : i32
    %c0_i32_0 = arith.constant 0 : i32
    %c0_i32_1 = arith.constant 0 : i32
    return %c0_i32, %c0_i32_0 : i32, i32
  }
  func.func @transform_2(%arg0: i32) -> (i32, i32) {
    %c0_i32 = arith.constant 0 : i32
    %c0_i32_0 = arith.constant 0 : i32
    %c0_i32_1 = arith.constant 0 : i32
    return %c0_i32, %c0_i32_0 : i32, i32
  }
  func.func @transform_3(%arg0: i32) -> (i32, i32) {
    %c0_i32 = arith.constant 0 : i32
    %c0_i32_0 = arith.constant 0 : i32
    %c0_i32_1 = arith.constant 0 : i32
    return %c0_i32, %c0_i32_0 : i32, i32
  }
  func.func @transform_4(%arg0: i32) -> (i32, i32) {
    %c0_i32 = arith.constant 0 : i32
    %c0_i32_0 = arith.constant 0 : i32
    %c0_i32_1 = arith.constant 0 : i32
    return %c0_i32, %c0_i32_0 : i32, i32
  }
  func.func @transform_5(%arg0: i32) -> (i32, i32) {
    %c0_i32 = arith.constant 0 : i32
    %c0_i32_0 = arith.constant 0 : i32
    %c0_i32_1 = arith.constant 0 : i32
    return %c0_i32, %c0_i32_0 : i32, i32
  }
  func.func @transform_6(%arg0: i32) -> (i32, i32) {
    %c0_i32 = arith.constant 0 : i32
    %c0_i32_0 = arith.constant 0 : i32
    %c0_i32_1 = arith.constant 0 : i32
    return %c0_i32, %c0_i32_0 : i32, i32
  }
  func.func @transform_7(%arg0: i32) -> (i32, i32) {
    %c0_i32 = arith.constant 0 : i32
    %c0_i32_0 = arith.constant 0 : i32
    return %arg0, %c0_i32 : i32, i32
  }
}

</mosaic_0001>

<bundles_post_ra>
// kernel: tpu_custom_call.1
= control target key start
LH: loop header
LB: loop body
LE: loop exit
PB: predicated region body
PF: predicated region fallthrough
CT: control target
= control target key end

     0   :  { %12 = vsyncpa [#allocation3], 0  ;;  %s1118_s0 = inlined_call_operand.vmem [shape: f32[48,16], index: 0, kind: input, shape index: {}]   ;;  %s1119_s1 = inlined_call_operand.hbm [shape: bf16[16,128], index: 1, kind: input, shape index: {}]   ;;  %s1120_s2 = inlined_call_operand.vmem [shape: f32[1,128], index: 2, kind: input, shape index: {}]   ;;  %s1121_s3 = inlined_call_operand.vmem [shape: bf16[128,128], index: 3, kind: input, shape index: {}]   ;;  %s1122_s4 = inlined_call_operand.vmem [shape: f32[1,128], index: 4, kind: input, shape index: {}]   ;;  %s1123_s5 = inlined_call_operand.hbm [shape: bf16[128,128], index: 5, kind: input, shape index: {}]   ;;  %s1124_s6 = inlined_call_operand.vmem [shape: f32[1,128], index: 6, kind: input, shape index: {}]   ;;  %s1125_s7 = inlined_call_operand.hbm [shape: f32[48,128], index: 7, kind: output, shape index: {}]  }
   0x1   :  { %13 = vsyncpa [#allocation6], 0 }
   0x2   :  { %14 = vsyncpa [#allocation4], 0 }
   0x3   :  { %16 = vsyncpa [#allocation4 + $0x1], 0  ;;  %s976_s24 = smov 0   ;;  %s978_s25 = smov 0  }
   0x4   :  { %s980_s26 = smov 0   ;;  %s982_s27 = smov 0  }
   0x5 LB: > { %s997_s28 = sadd.s32 4294967295, %s928_s27   ;;  %s620_s29 = sadd.s32 4294967294, %s928_s27   ;;  %s928_s27 = sphi %s982_s27, %s1132_s27   ;;  %s924_s26 = sphi %s980_s26, %s1131_s26   ;;  %s920_s25 = sphi %s978_s25, %s1130_s25   ;;  %s916_s24 = sphi %s976_s24, %s1129_s24  }
   0x6   : > { %s1001_s30 = sadd.s32 1, %s928_s27   ;;  %s181_s8 = sadd.s32 1, %s924_s26 }
   0x7   : > { %s178_s9 = ssub.s32 %s928_s27, %s1001_s30  ;;  %p191_p0 = scmp.ne.s32.totalorder %s924_s26, %s920_s25 }
   0x8   : > { %p179_p1 = scmp.eq.s32.totalorder %s178_s9, 0  ;;  %p192_p2 = scmp.eq.s32.totalorder %s997_s28, 2 }
   0x9   : > { %p197_p3 = scmp.ne.s32.totalorder %s920_s25, %s916_s24  ;;  %p198_p4 = scmp.eq.s32.totalorder %s620_s29, 2 }
   0xa   : > { %s1012_s10 = scalar_select %p179_p1, %s924_s26, %s181_s8  }
   0xb   : > { %p1014_p5 = por %p192_p2, %p191_p0  ;;  %p1018_p6 = por %p198_p4, %p197_p3 }
   0xc   : > { %p621_p7 = scmp.ge.s32.totalorder %s928_s27, 1  ;;  %p205_p8 = scmp.lt.s32.totalorder %s928_s27, 4 }
   0xd   : > { %p744_p9 = scmp.eq.s32.totalorder %s997_s28, 0  ;;  %s216_s16 = sshll.u32 %s1119_s1, 4  ;;  %s217_s16 = int_to_ptr.hbm [resolvable:$true] %s216_s16 }
   0xe   : > { %p1025_p10 = pnand %p621_p7, %p205_p8  ;;  %s930_s17 = smov [#allocation2]  }
   0xf   : > { %s218_s18 = sshll.u32 %s930_s17, 4  ;;  %s239_s21 = sshll.u32 %s1123_s5, 4  ;;  %s219_s18 = int_to_ptr.vmem [resolvable:$true] %s218_s18  ;;  %s240_s21 = int_to_ptr.hbm [resolvable:$true] %s239_s21 }
  0x10   : > { %p733_p11 = pneg %p1025_p10  ;;  %s931_s22 = smov 64  }
  0x11   : > { %s932_s23 = smov 4   ;;  %s933_s29 = smov [#allocation5]  }
  0x12   : > { %p734_p12 = pnand %p744_p9, %p733_p11  ;;  %s241_s8 = sshll.u32 %s933_s29, 4  ;;  %s242_s8 = int_to_ptr.vmem [resolvable:$true] %s241_s8 }
  0x13   : > { %269 = sbr.rel (%p1025_p10) target bundleno = 472 (0x1d8), region = 48 }
  0x14   : > { %736 = dma.hbm_to_vmem [thread:$0]  (!%p734_p12), %s217_s16, 128, %s219_s18, [#allocation3], %s931_s22, %s931_s22, %s932_s23  }
  0x15   : > { %739 = dma.hbm_to_vmem [thread:$0]  (!%p734_p12), %s240_s21, 1024, %s242_s8, [#allocation6], %s931_s22, %s931_s22, %s932_s23  }
  0x18   : > { %903 = dma.done.wait (%p744_p9), [#allocation3], 128  }
  0x19   : > { %905 = vsyncadd (%p744_p9), [#allocation3], 4294967168 }
  0x1a   : > { %907 = dma.done.wait (%p744_p9), [#allocation6], 1024  }
  0x1b   : > { %909 = vsyncadd (%p744_p9), [#allocation6], 4294966272  ;;  %s629_s9 = sshll.u32 %s997_s28, 1  ;;  %v705_v0 = vld [vmem:[#allocation2] sm:$0xff]  ;;  %v713_v4 = vld [vmem:[%s1121_s3 + $0x38] sm:$0xff]  ;;  %vm330_vm0 = vcmask 130048  }
  0x1c   : > { %p308_p13 = scmp.lt.s32.totalorder %s629_s9, 5  ;;  %341 = vmatpush.bf16.msra.mxu0 %v705_v0  ;;  %419 = vmatpush.bf16.msra.mxu1 %v713_v4  ;;  %v712_v5 = vld [vmem:[%s1121_s3 + $0x30] sm:$0xff]  ;;  %v711_v6 = vld [vmem:[%s1121_s3 + $0x28] sm:$0xff]  ;;  %v710_v7 = vld [vmem:[%s1121_s3 + $0x20] sm:$0xff]  ;;  %s304_s23 = sand.u32 1, %s920_s25  }
  0x1d   : > { %v709_v8 = vld [vmem:[%s1121_s3 + $0x18] sm:$0xff]  ;;  %v708_v9 = vld [vmem:[%s1121_s3 + $0x10] sm:$0xff]  ;;  %v707_v10 = vld [vmem:[%s1121_s3 + $0x8] sm:$0xff]  ;;  %s628_s29 = sshll.u32 %s304_s23, 4  ;;  %s521_s20 = scalar_lea.sflag [#allocation4], %s304_s23 }
  0x1e   : > { %s1134_s9 = smov (!%p308_p13, %s629_s9), 5  ;;  %v706_v11 = vld [vmem:[%s1121_s3] sm:$0xff]  ;;  %v720_v13 = vld [vmem:[#allocation5 + $0x30] sm:$0xff]  ;;  %v719_v14 = vld [vmem:[#allocation5 + $0x28] sm:$0xff]  ;;  %s306_s17 = scalar_lea.vmem [#allocation7], %s628_s29 }
  0x1f   : > { %s630_s14 = sshll.u32 %s1134_s9, 3  ;;  %v721_v12 = vld [vmem:[#allocation5 + $0x38] sm:$0xff]  ;;  %v718_v23 = vld [vmem:[#allocation5 + $0x20] sm:$0xff]  ;;  %v716_v25 = vld [vmem:[#allocation5 + $0x10] sm:$0xff]  ;;  %s533_s18 = sshll.u32 %s306_s17, 4  ;;  %s534_s18 = int_to_ptr.vmem [resolvable:$true] %s533_s18 }
  0x20   : > { %s311_s16 = scalar_lea.vmem %s1118_s0, %s630_s14  ;;  %420 = vmatpush.bf16.msra.mxu1 %v712_v5  ;;  %504 = vmatpush.bf16.msra.mxu2 %v721_v12  ;;  %v787_v16 = vld [vmem:[%s1120_s2] ss:$0 sm:$0xff]  ;;  %v715_v26 = vld [vmem:[#allocation5 + $0x8] sm:$0xff]  ;;  %v714_v27 = vld [vmem:[#allocation5] sm:$0xff]  ;;  %s722_s14 = sshll.u32 %s997_s28, 4 }
  0x21   : > { %v315_v1 = vld [vmem:[%s311_s16] sm:$0xff]  ;;  %v316_v2 = vld [vmem:[%s311_s16 + $0x8] sm:$0xff]  ;;  %s532_s16 = scalar_lea.hbm %s1125_s7, %s722_s14  ;;  %s878_s29 = scalar_lea.hbm %s1125_s7, 48 }
  0x22   : > { %v320_v3 = vpack.c.bf16 %v316_v2, %v315_v1  ;;  %v717_v24 = vld [vmem:[#allocation5 + $0x18] sm:$0xff]  ;;  %s535_s19 = sshll.u32 %s532_s16, 4  ;;  %s536_s19 = int_to_ptr.hbm [resolvable:$true] %s535_s19 }
  0x23   : > { %v788_v29 = vld [vmem:[%s1122_s4] ss:$0 sm:$0xff]  ;;  %s872_s21 = sshra.s32 %s536_s19, 4  ;;  %s873_s21 = int_to_ptr.hbm [resolvable:$true] %s872_s21 }
  0x24   : > { %635 = vmatmul.msk.bf16.vlgmr.msra.gmra.mxu0 %vm330_vm0, %v320_v3  ;;  %421 = vmatpush.bf16.msra.mxu1 %v711_v6  ;;  %v789_v36 = vld [vmem:[%s1124_s6] ss:$0 sm:$0xff]  ;;  %s874_s28 = scalar_lea.hbm %s873_s21, 16  ;;  %p879_p3 = scmp.lt.s32.totalorder %s873_s21, %s1125_s7 }
  0x25   : > { %505 = vmatpush.bf16.msra.mxu2 %v720_v13  ;;  %p875_p0 = scmp.ne.s32.totalorder %s873_s21, %s874_s28  ;;  %p880_p4 = scmp.lt.s32.totalorder %s878_s29, %s874_s28 }
  0x27   : > { %p876_p1 = pnand %p875_p0, %p1014_p5  ;;  %p881_p7 = por %p880_p4, %p879_p3 }
  0x28   : > { %422 = vmatpush.bf16.msra.mxu1 %v710_v7 }
  0x29   : > { %506 = vmatpush.bf16.msra.mxu2 %v719_v14  ;;  %p877_p2 = pneg %p876_p1 }
  0x2b   : > { %p882_p8 = pnand %p881_p7, %p877_p2 }
  0x2c   : > { %423 = vmatpush.bf16.msra.mxu1 %v709_v8 }
  0x2d   : > { %507 = vmatpush.bf16.msra.mxu2 %v718_v23 }
  0x30   : > { %424 = vmatpush.bf16.msra.mxu1 %v708_v9 }
  0x31   : > { %508 = vmatpush.bf16.msra.mxu2 %v717_v24 }
  0x34   : > { %425 = vmatpush.bf16.msra.mxu1 %v707_v10 }
  0x35   : > { %509 = vmatpush.bf16.msra.mxu2 %v716_v25 }
  0x38   : > { %426 = vmatpush.bf16.msra.mxu1 %v706_v11 }
  0x39   : > { %510 = vmatpush.bf16.msra.mxu2 %v715_v26 }
  0x3d   : > { %511 = vmatpush.bf16.msra.mxu2 %v714_v27 }
  0xa1   : > { %v343_v15 = vpop.f32.mrf.mxu0 }
  0xa2   : > { %v344_v17 = vadd.f32 %v787_v16, %v343_v15 }
  0xa4   : > { %790 = vtanh.f32 %v344_v17 }
  0xa9   : > { %v345_v18 = vpop.f32.mrf.mxu0 }
  0xaa   : > { %v346_v19 = vadd.f32 %v787_v16, %v345_v18  ;;  %v791_v20 = vpop.eup %790 }
  0xac   : > { %792 = vtanh.f32 %v346_v19 }
  0xb2   : > { %v793_v21 = vpop.eup %792 }
  0xb3   : > { %v367_v22 = vpack.c.bf16 %v793_v21, %v791_v20 }
  0xb5   : > { %427 = vmatmul.bf16.vlgmr.msra.gmra.mxu1 %v367_v22 }
 0x132   : > { %v428_v28 = vpop.f32.mrf.mxu1 }
 0x133   : > { %v429_v30 = vadd.f32 %v788_v29, %v428_v28 }
 0x135   : > { %794 = vtanh.f32 %v429_v30 }
 0x13a   : > { %v430_v31 = vpop.f32.mrf.mxu1 }
 0x13b   : > { %v431_v32 = vadd.f32 %v788_v29, %v430_v31  ;;  %v795_v33 = vpop.eup %794 }
 0x13d   : > { %796 = vtanh.f32 %v431_v32 }
 0x143   : > { %v797_v34 = vpop.eup %796 }
 0x144   : > { %v452_v35 = vpack.c.bf16 %v797_v34, %v795_v33 }
 0x146   : > { %512 = vmatmul.bf16.vlgmr.msra.gmra.mxu2 %v452_v35 }
 0x1c9   : > { %v513_v37 = vpop.f32.mrf.mxu2 }
 0x1ca   : > { %v514_v38 = vadd.f32 %v789_v36, %v513_v37 }
 0x1cc   : > { %518 = vst [vmem:[%s306_s17] sm:$0xff] %v514_v38 }
 0x1d1   : > { %v515_v39 = vpop.f32.mrf.mxu2 }
 0x1d2   : > { %v516_v40 = vadd.f32 %v789_v36, %v515_v39 }
 0x1d4   : > { %519 = vst [vmem:[%s306_s17 + $0x8] sm:$0xff] %v516_v40 }
 0x1d5   : > { %885 = shalt.err (!%p882_p8)
}
 0x1d6   : > { %s934_s23 = smov 128   ;;  %s935_s15 = smov 8  }
 0x1d7   : > { %731 = dma.vmem_to_hbm [thread:$0]  (%p1014_p5), %s534_s18, 256, %s536_s19, %s521_s20, %s934_s23, %s934_s23, %s935_s15  }
 0x1d8 PF: > { %p748_p9 = scmp.ge.s32.totalorder %s928_s27, 2  ;;  %s550_s13 = sand.u32 1, %s916_s24  }
 0x1d9   : > { %s551_s16 = scalar_lea.sflag [#allocation4], %s550_s13 }
 0x1da   : > { %p741_p10 = pnand %p748_p9, %p1018_p6 }
 0x1dc   : > { %p742_p11 = pneg %p741_p10 }
 0x1de   : > { %911 = dma.done.wait (%p742_p11), %s551_s16, 256  }
 0x1df   : > { %913 = vsyncadd (%p742_p11), %s551_s16, 4294967040  ;;  %p19_p12 = scmp.ge.s32.totalorder %s1001_s30, 5   ;;  %s1129_s24 = smov %s920_s25 }
 0x1e0   : > { %s1130_s25 = smov %s924_s26  ;;  %s1131_s26 = smov %s1012_s10 }
 0x1e1   : > { %s1132_s27 = smov %s1001_s30  ;;  %21 = sbr.rel (!%p19_p12) target bundleno = 5 (0x5), region = 92 }
 0x1e6   :  { %557 = vsyncpa [#allocation3], 1 }
 0x1e7   :  { %559 = vsyncpa [#allocation3 + $0x1], 1 }
 0x1e8   :  { %560 = vsyncpa [#allocation6], 1 }
 0x1e9   :  { %561 = vsyncpa [#allocation4], 1 }
 0x1ea   :  { %563 = vsyncpa [#allocation4 + $0x1], 1 }

</bundles_post_ra>
